<compile_context>
chip_gen: v7x
topology: tpu7x:2x2x1
jax: 0.10.0
libtpu: 0.0.40
codegen_flags: <defaults>
</compile_context>

<pallas_src>
import functools
import math

import jax
import jax.numpy as jnp
from jax.experimental import pallas as pl
from jax.experimental.pallas import tpu as pltpu


def _round_up(x: int, m: int) -> int:
    return ((x + m - 1) // m) * m


def _embedding_gather_kernel(ids_ref, w_hbm, out_ref, copy_sem, *, tpb, unroll):
    """DMA-gather `tpb` rows of the HBM weight table into the VMEM output tile.

    ids_ref  : scalar-prefetched flat token ids in SMEM, shape (n_pad,)
    w_hbm    : raw HBM ref of the weight table, shape (V, D)
    out_ref  : VMEM output tile, shape (tpb, D)
    copy_sem : single counting DMA semaphore shared by all row copies
    """
    base = pl.program_id(0) * tpb

    # Phase 1: issue every row DMA (HBM -> VMEM output tile). Nothing waits yet, so all
    # copies stay in flight together and HBM bandwidth, not per-row latency, is the
    # limiter.  The issue loop is unrolled so address math packs with descriptor pushes
    # (descriptor issue is scalar/misc-slot bound when D is small).
    @pl.loop(0, tpb // unroll)
    def _start(g):
        t0 = pl.multiple_of(g * unroll, unroll)
        for u in range(unroll):                      # static unroll
            t = t0 + u
            row = ids_ref[base + t]
            pltpu.make_async_copy(
                w_hbm.at[pl.ds(row, 1), :],
                out_ref.at[pl.ds(t, 1), :],
                copy_sem,
            ).start()

    # Phase 2: single aggregate drain. DMA semaphores count bytes; this descriptor's
    # size (tpb * D * itemsize) equals the sum of all row copies above by construction,
    # so one wait replaces tpb per-row waits (no long scalar drain epilogue).
    pltpu.make_async_copy(out_ref, out_ref, copy_sem).wait()


def parallel_embedding(ids, weight, *, tokens_per_block=512, vmem_tile_bytes=4 << 20):
    """Pallas embedding lookup equivalent to F.embedding(ids, weight) (world_size == 1)."""
    batch, seq = ids.shape
    V, D = weight.shape
    num_tokens = batch * seq
    itemsize = jnp.dtype(weight.dtype).itemsize
    sublane = 8 * (4 // itemsize)                    # 8 f32 / 16 bf16 / 32 int8
    unroll = 8                                       # sublane is always a multiple of 8

    # ---- choose the token tile: biggest that fits the VMEM budget, prefer one that
    # ---- divides num_tokens exactly (no padded tail, no post-kernel slice copy).
    row_bytes = max(1, D * itemsize)
    tpb_cap = max(sublane, min(max(tokens_per_block, sublane), vmem_tile_bytes // row_bytes))
    tpb_cap = max(sublane, (tpb_cap // sublane) * sublane)
    if num_tokens <= tpb_cap:
        tpb = _round_up(num_tokens, sublane)
    else:
        tpb = tpb_cap
        if num_tokens % sublane == 0:
            for t in range(tpb_cap, max(sublane, tpb_cap // 2) - 1, -sublane):
                if num_tokens % t == 0:
                    tpb = t
                    break
    n_pad = _round_up(num_tokens, tpb)

    flat_ids = ids.reshape(num_tokens).astype(jnp.int32)
    # Guard against silent OOB DMA reads (F.embedding would raise; we clamp instead).
    flat_ids = jnp.clip(flat_ids, 0, V - 1)
    if n_pad != num_tokens:
        flat_ids = jnp.pad(flat_ids, (0, n_pad - num_tokens))

    grid = (n_pad // tpb,)
    tile_bytes = tpb * D * itemsize
    # Output tile is double-buffered by the pipeline; leave generous slack for internals.
    vmem_limit = int(min(max(2 * tile_bytes + (2 << 20), 8 << 20), 64 << 20))

    out_flat = pl.pallas_call(
        functools.partial(_embedding_gather_kernel, tpb=tpb, unroll=unroll),
        out_shape=jax.ShapeDtypeStruct((n_pad, D), weight.dtype),
        grid_spec=pltpu.PrefetchScalarGridSpec(
            num_scalar_prefetch=1,                   # flat ids -> SMEM before the grid
            grid=grid,
            in_specs=[
                pl.BlockSpec(memory_space=pl.ANY),   # weight table stays in HBM
            ],
            out_specs=pl.BlockSpec((tpb, D), lambda i, ids: (i, 0)),
            scratch_shapes=[pltpu.SemaphoreType.DMA(())],
        ),
        compiler_params=pltpu.CompilerParams(
            dimension_semantics=("parallel",),       # token tiles are independent
            vmem_limit_bytes=vmem_limit,
        ),
    )(flat_ids, weight)

    out = out_flat if n_pad == num_tokens else out_flat[:num_tokens]
    return out.reshape(batch, seq, D)


if __name__ == "__main__":
    # Deterministic synthetic setup (world_size == 1 -> full embedding_dim on this device).
    # padding_idx / max_norm / scale_grad_by_freq / sparse keep torch defaults (no-ops here).
    num_embeddings = 64
    embedding_dim = 256          # multiple of 128 -> fully lane-dense writeback
    batch, seq = 2, 8

    key = jax.random.PRNGKey(0)
    k_w, k_ids, k_w2, k_ids3 = jax.random.split(key, 4)

    # xavier_normal_ init: std = sqrt(2 / (fan_in + fan_out))
    std = math.sqrt(2.0 / (num_embeddings + embedding_dim))
    weight = jax.random.normal(k_w, (num_embeddings, embedding_dim), dtype=jnp.float32) * std
    ids = jax.random.randint(k_ids, (batch, seq), 0, num_embeddings, dtype=jnp.int32)

    out = jax.block_until_ready(parallel_embedding(ids, weight))
    ref = jnp.take(weight, ids, axis=0)
    assert out.shape == (batch, seq, embedding_dim)
    assert bool(jnp.array_equal(out, ref)), "mismatch vs reference gather (lane-dense path)"

    # Check 2: non-128-multiple embedding_dim (true-D output block, no table padding).
    dim2 = 32
    std2 = math.sqrt(2.0 / (num_embeddings + dim2))
    weight2 = jax.random.normal(k_w2, (num_embeddings, dim2), dtype=jnp.float32) * std2
    out2 = jax.block_until_ready(parallel_embedding(ids, weight2))
    ref2 = jnp.take(weight2, ids, axis=0)
    assert out2.shape == (batch, seq, dim2)
    assert bool(jnp.array_equal(out2, ref2)), "mismatch vs reference gather (narrow-D path)"

    # Check 3: multiple grid blocks (tokens_per_block smaller than num_tokens).
    ids3 = jax.random.randint(k_ids3, (4, 8), 0, num_embeddings, dtype=jnp.int32)
    out3 = jax.block_until_ready(parallel_embedding(ids3, weight, tokens_per_block=8))
    ref3 = jnp.take(weight, ids3, axis=0)
    assert out3.shape == (4, 8, embedding_dim)
    assert bool(jnp.array_equal(out3, ref3)), "mismatch vs reference gather (multi-block path)"

    print("KERNEL_OK")
</pallas_src>

<mosaic_0001>
module attributes {stable_mosaic.version = 11 : i64} {
  func.func @_embedding_gather_kernel(%arg0: i32, %arg1: memref<16xi32, #tpu.memory_space<smem>>, %arg2: memref<64x256xf32, #tpu.memory_space<any>>, %arg3: memref<16x256xf32, #tpu.memory_space<vmem>>, %arg4: memref<!tpu.dma_semaphore, #tpu.memory_space<semaphore_mem>>) attributes {dimension_semantics = [#tpu.dimension_semantics<parallel>], iteration_bounds = array<i64: 1>, scalar_prefetch = 1 : i64, scratch_operands = 1 : i64, tpu.core_type = #tpu.core_type<tc>, window_params = [{}, {transform_indices = @transform_1, window_bounds = array<i64: 16, 256>}]} {
    %c16_i32 = arith.constant 16 : i32
    %0 = arith.muli %arg0, %c16_i32 : i32
    %c0_i32 = arith.constant 0 : i32
    %c2_i32 = arith.constant 2 : i32
    %1 = arith.addi %c0_i32, %c2_i32 : i32
    %c1_i32 = arith.constant 1 : i32
    scf.for %arg5 = %c0_i32 to %1 step %c1_i32  : i32 {
      %c1_i32_1 = arith.constant 1 : i32
      %2 = arith.muli %arg5, %c1_i32_1 : i32
      %c0_i32_2 = arith.constant 0 : i32
      %3 = arith.addi %c0_i32_2, %2 : i32
      %c8_i32 = arith.constant 8 : i32
      %4 = arith.muli %3, %c8_i32 : i32
      %5 = tpu.assume_multiple %4, 8 : i32
      %c0_i32_3 = arith.constant 0 : i32
      %6 = arith.addi %5, %c0_i32_3 : i32
      %7 = arith.addi %0, %6 : i32
      %8 = arith.index_cast %7 : i32 to index
      %9 = memref.load %arg1[%8] : memref<16xi32, #tpu.memory_space<smem>>
      %c0_i32_4 = arith.constant 0 : i32
      %10 = tpu.memref_slice %arg2[%9, %c0_i32_4] : memref<64x256xf32, #tpu.memory_space<any>> -> memref<1x256xf32, #tpu.memory_space<any>>
      %c0_i32_5 = arith.constant 0 : i32
      %11 = tpu.memref_slice %arg3[%6, %c0_i32_5] : memref<16x256xf32, #tpu.memory_space<vmem>> -> memref<1x256xf32, #tpu.memory_space<vmem>>
      tpu.enqueue_dma source(%10 : memref<1x256xf32, #tpu.memory_space<any>>) target(%11 : memref<1x256xf32, #tpu.memory_space<vmem>>) target_semaphore(%arg4 : memref<!tpu.dma_semaphore, #tpu.memory_space<semaphore_mem>>)
      %c1_i32_6 = arith.constant 1 : i32
      %12 = arith.addi %5, %c1_i32_6 : i32
      %13 = arith.addi %0, %12 : i32
      %14 = arith.index_cast %13 : i32 to index
      %15 = memref.load %arg1[%14] : memref<16xi32, #tpu.memory_space<smem>>
      %c0_i32_7 = arith.constant 0 : i32
      %16 = tpu.memref_slice %arg2[%15, %c0_i32_7] : memref<64x256xf32, #tpu.memory_space<any>> -> memref<1x256xf32, #tpu.memory_space<any>>
      %c0_i32_8 = arith.constant 0 : i32
      %17 = tpu.memref_slice %arg3[%12, %c0_i32_8] : memref<16x256xf32, #tpu.memory_space<vmem>> -> memref<1x256xf32, #tpu.memory_space<vmem>>
      tpu.enqueue_dma source(%16 : memref<1x256xf32, #tpu.memory_space<any>>) target(%17 : memref<1x256xf32, #tpu.memory_space<vmem>>) target_semaphore(%arg4 : memref<!tpu.dma_semaphore, #tpu.memory_space<semaphore_mem>>)
      %c2_i32_9 = arith.constant 2 : i32
      %18 = arith.addi %5, %c2_i32_9 : i32
      %19 = arith.addi %0, %18 : i32
      %20 = arith.index_cast %19 : i32 to index
      %21 = memref.load %arg1[%20] : memref<16xi32, #tpu.memory_space<smem>>
      %c0_i32_10 = arith.constant 0 : i32
      %22 = tpu.memref_slice %arg2[%21, %c0_i32_10] : memref<64x256xf32, #tpu.memory_space<any>> -> memref<1x256xf32, #tpu.memory_space<any>>
      %c0_i32_11 = arith.constant 0 : i32
      %23 = tpu.memref_slice %arg3[%18, %c0_i32_11] : memref<16x256xf32, #tpu.memory_space<vmem>> -> memref<1x256xf32, #tpu.memory_space<vmem>>
      tpu.enqueue_dma source(%22 : memref<1x256xf32, #tpu.memory_space<any>>) target(%23 : memref<1x256xf32, #tpu.memory_space<vmem>>) target_semaphore(%arg4 : memref<!tpu.dma_semaphore, #tpu.memory_space<semaphore_mem>>)
      %c3_i32 = arith.constant 3 : i32
      %24 = arith.addi %5, %c3_i32 : i32
      %25 = arith.addi %0, %24 : i32
      %26 = arith.index_cast %25 : i32 to index
      %27 = memref.load %arg1[%26] : memref<16xi32, #tpu.memory_space<smem>>
      %c0_i32_12 = arith.constant 0 : i32
      %28 = tpu.memref_slice %arg2[%27, %c0_i32_12] : memref<64x256xf32, #tpu.memory_space<any>> -> memref<1x256xf32, #tpu.memory_space<any>>
      %c0_i32_13 = arith.constant 0 : i32
      %29 = tpu.memref_slice %arg3[%24, %c0_i32_13] : memref<16x256xf32, #tpu.memory_space<vmem>> -> memref<1x256xf32, #tpu.memory_space<vmem>>
      tpu.enqueue_dma source(%28 : memref<1x256xf32, #tpu.memory_space<any>>) target(%29 : memref<1x256xf32, #tpu.memory_space<vmem>>) target_semaphore(%arg4 : memref<!tpu.dma_semaphore, #tpu.memory_space<semaphore_mem>>)
      %c4_i32 = arith.constant 4 : i32
      %30 = arith.addi %5, %c4_i32 : i32
      %31 = arith.addi %0, %30 : i32
      %32 = arith.index_cast %31 : i32 to index
      %33 = memref.load %arg1[%32] : memref<16xi32, #tpu.memory_space<smem>>
      %c0_i32_14 = arith.constant 0 : i32
      %34 = tpu.memref_slice %arg2[%33, %c0_i32_14] : memref<64x256xf32, #tpu.memory_space<any>> -> memref<1x256xf32, #tpu.memory_space<any>>
      %c0_i32_15 = arith.constant 0 : i32
      %35 = tpu.memref_slice %arg3[%30, %c0_i32_15] : memref<16x256xf32, #tpu.memory_space<vmem>> -> memref<1x256xf32, #tpu.memory_space<vmem>>
      tpu.enqueue_dma source(%34 : memref<1x256xf32, #tpu.memory_space<any>>) target(%35 : memref<1x256xf32, #tpu.memory_space<vmem>>) target_semaphore(%arg4 : memref<!tpu.dma_semaphore, #tpu.memory_space<semaphore_mem>>)
      %c5_i32 = arith.constant 5 : i32
      %36 = arith.addi %5, %c5_i32 : i32
      %37 = arith.addi %0, %36 : i32
      %38 = arith.index_cast %37 : i32 to index
      %39 = memref.load %arg1[%38] : memref<16xi32, #tpu.memory_space<smem>>
      %c0_i32_16 = arith.constant 0 : i32
      %40 = tpu.memref_slice %arg2[%39, %c0_i32_16] : memref<64x256xf32, #tpu.memory_space<any>> -> memref<1x256xf32, #tpu.memory_space<any>>
      %c0_i32_17 = arith.constant 0 : i32
      %41 = tpu.memref_slice %arg3[%36, %c0_i32_17] : memref<16x256xf32, #tpu.memory_space<vmem>> -> memref<1x256xf32, #tpu.memory_space<vmem>>
      tpu.enqueue_dma source(%40 : memref<1x256xf32, #tpu.memory_space<any>>) target(%41 : memref<1x256xf32, #tpu.memory_space<vmem>>) target_semaphore(%arg4 : memref<!tpu.dma_semaphore, #tpu.memory_space<semaphore_mem>>)
      %c6_i32 = arith.constant 6 : i32
      %42 = arith.addi %5, %c6_i32 : i32
      %43 = arith.addi %0, %42 : i32
      %44 = arith.index_cast %43 : i32 to index
      %45 = memref.load %arg1[%44] : memref<16xi32, #tpu.memory_space<smem>>
      %c0_i32_18 = arith.constant 0 : i32
      %46 = tpu.memref_slice %arg2[%45, %c0_i32_18] : memref<64x256xf32, #tpu.memory_space<any>> -> memref<1x256xf32, #tpu.memory_space<any>>
      %c0_i32_19 = arith.constant 0 : i32
      %47 = tpu.memref_slice %arg3[%42, %c0_i32_19] : memref<16x256xf32, #tpu.memory_space<vmem>> -> memref<1x256xf32, #tpu.memory_space<vmem>>
      tpu.enqueue_dma source(%46 : memref<1x256xf32, #tpu.memory_space<any>>) target(%47 : memref<1x256xf32, #tpu.memory_space<vmem>>) target_semaphore(%arg4 : memref<!tpu.dma_semaphore, #tpu.memory_space<semaphore_mem>>)
      %c7_i32 = arith.constant 7 : i32
      %48 = arith.addi %5, %c7_i32 : i32
      %49 = arith.addi %0, %48 : i32
      %50 = arith.index_cast %49 : i32 to index
      %51 = memref.load %arg1[%50] : memref<16xi32, #tpu.memory_space<smem>>
      %c0_i32_20 = arith.constant 0 : i32
      %52 = tpu.memref_slice %arg2[%51, %c0_i32_20] : memref<64x256xf32, #tpu.memory_space<any>> -> memref<1x256xf32, #tpu.memory_space<any>>
      %c0_i32_21 = arith.constant 0 : i32
      %53 = tpu.memref_slice %arg3[%48, %c0_i32_21] : memref<16x256xf32, #tpu.memory_space<vmem>> -> memref<1x256xf32, #tpu.memory_space<vmem>>
      tpu.enqueue_dma source(%52 : memref<1x256xf32, #tpu.memory_space<any>>) target(%53 : memref<1x256xf32, #tpu.memory_space<vmem>>) target_semaphore(%arg4 : memref<!tpu.dma_semaphore, #tpu.memory_space<semaphore_mem>>)
    }
    %c2_i32_0 = arith.constant 2 : i32
    tpu.wait_dma2 semaphore(%arg4 : memref<!tpu.dma_semaphore, #tpu.memory_space<semaphore_mem>>) src(%arg3 : memref<16x256xf32, #tpu.memory_space<vmem>>) dst(%arg3 : memref<16x256xf32, #tpu.memory_space<vmem>>)
    return
  }
  func.func @transform_1(%arg0: i32, %arg1: memref<16xi32, #tpu.memory_space<smem>>) -> (i32, i32) {
    %c0_i32 = arith.constant 0 : i32
    %c0_i32_0 = arith.constant 0 : i32
    return %arg0, %c0_i32 : i32, i32
  }
}

</mosaic_0001>

<bundles_post_ra>
// kernel: tpu_custom_call.1
= control target key start
LH: loop header
LB: loop body
LE: loop exit
PB: predicated region body
PF: predicated region fallthrough
CT: control target
= control target key end

     0   :  { %s760_s0 = inlined_call_operand.hbm [shape: s32[16], index: 0, kind: input, shape index: {}]   ;;  %s761_s1 = inlined_call_operand.hbm [shape: f32[64,256], index: 1, kind: input, shape index: {}]   ;;  %s762_s2 = inlined_call_operand.hbm [shape: f32[16,256], index: 2, kind: output, shape index: {}]  }
   0x1   :  { %s298_s11 = scalar_lea.hbm %s760_s0, 16 }
   0x2   :  { %p299_p0 = scmp.ne.s32.totalorder %s760_s0, %s298_s11  ;;  %p302_p1 = scmp.lt.u32.totalorder %s298_s11, %s760_s0 }
   0x4   :  { %p304_p2 = pnand %p302_p1, %p299_p0 }
   0x6   :  { %307 = shalt.err (!%p304_p2)  }
   0x7   :  { %s536_s16 = smov [#allocation4]  }
   0x8   :  { %8 = dma.hbm_to_smem %s760_s0, 16, %s536_s16, [#allocation3] }
   0x9   :  { %526 = dma.done.wait [#allocation3], 16 }
   0xa   :  { %527 = vsyncadd [#allocation3], 4294967280 }
   0xb   :  { %10 = sfence }
   0xc   :  { %11 = vsyncpa [#allocation6], 0  ;;  %s569_s19 = smov 0  }
   0xd LB: > { %s575_s20 = sshll.u32 %s534_s19, 3  ;;  %s595_s18 = scalar_lea.hbm %s761_s1, 2048  ;;  %s534_s19 = sphi %s569_s19, %s18_s19  }
   0xe   : > { %s21_s21 = sld [smem:[#allocation4 + %s575_s20]]  ;;  %s28_s0 = sshrl.u32 %s575_s20, 3 }
   0xf   : > { %s29_s22 = sand.u32 7, %s575_s20   ;;  %s261_s23 = sshll.u32 %s28_s0, 4 }
  0x10   : > { %s31_s24 = sadd.s32 %s261_s23, %s29_s22  ;;  %s38_s25 = sadd.s32 1, %s575_s20 }
  0x11   : > { %s581_s26 = sld [smem:[#allocation4 + %s38_s25]]  ;;  %s32_s27 = scalar_lea.vmem [#allocation5], %s31_s24 }
  0x12   : > { %s34_s28 = sshll.u32 %s32_s27, 4  ;;  %s47_s29 = sshrl.u32 %s38_s25, 3  ;;  %s583_s28 = int_to_ptr.vmem [resolvable:$true] %s34_s28 }
  0x13   : > { %s48_s30 = sand.u32 7, %s38_s25   ;;  %s264_s6 = sshll.u32 %s47_s29, 4 }
  0x14   : > { %s22_s3 = sshrl.u32 %s21_s21, 3  ;;  %s23_s4 = sand.u32 7, %s21_s21  }
  0x15   : > { %s259_s5 = sshll.u32 %s22_s3, 4  ;;  %s585_s8 = sadd.s32 %s264_s6, %s48_s30 }
  0x16   : > { %s25_s7 = sadd.s32 %s259_s5, %s23_s4 }
  0x17   : > { %s260_s9 = sshll.u32 %s25_s7, 4  ;;  %s41_s10 = sshrl.u32 %s581_s26, 3 }
  0x18   : > { %s27_s13 = scalar_lea.hbm %s761_s1, %s260_s9  ;;  %s42_s14 = sand.u32 7, %s581_s26  }
  0x19   : > { %s308_s15 = scalar_lea.hbm %s27_s13, 32  ;;  %p311_p4 = scmp.lt.u32.totalorder %s27_s13, %s761_s1 }
  0x1a   : > { %p309_p3 = scmp.ne.s32.totalorder %s27_s13, %s308_s15  ;;  %p312_p5 = scmp.lt.u32.totalorder %s595_s18, %s308_s15 }
  0x1b   : > { %p314_p7 = scmp.lt.u32.totalorder %s308_s15, %s27_s13 }
  0x1c   : > { %p313_p6 = por %p312_p5, %p311_p4 }
  0x1e   : > { %p315_p8 = por %p314_p7, %p313_p6 }
  0x20   : > { %p316_p9 = pnand %p315_p8, %p309_p3 }
  0x22   : > { %319 = shalt.err (!%p316_p9)  }
  0x23   : > { %s320_s22 = scalar_lea.vmem %s583_s28, 32  ;;  %s537_s23 = smov [#allocation5]  }
  0x24   : > { %p321_p10 = scmp.ne.s32.totalorder %s583_s28, %s320_s22  ;;  %s322_s24 = sshll.u32 %s537_s23, 4  ;;  %s603_s24 = int_to_ptr.vmem [resolvable:$false] %s322_s24 }
  0x25   : > { %s606_s25 = scalar_lea.vmem %s603_s24, 512  ;;  %p325_p11 = scmp.lt.s32.totalorder %s583_s28, %s603_s24 }
  0x26   : > { %p326_p12 = scmp.lt.s32.totalorder %s606_s25, %s320_s22 }
  0x28   : > { %p327_p13 = por %p326_p12, %p325_p11 }
  0x2a   : > { %p328_p0 = pnand %p327_p13, %p321_p10 }
  0x2c   : > { %331 = shalt.err (!%p328_p0)  }
  0x2d   : > { %s538_s27 = smov 128   ;;  %s539_s29 = smov 1  }
  0x2e   : > { %37 = dma.hbm_to_vmem [thread:$0]  %s27_s13, 32, %s583_s28, [#allocation2], %s538_s27, %s538_s27, %s539_s29 }
  0x2f   : > { %s262_s30 = sshll.u32 %s41_s10, 4  ;;  %s51_s4 = scalar_lea.vmem [#allocation5], %s585_s8 }
  0x30   : > { %s44_s3 = sadd.s32 %s262_s30, %s42_s14  ;;  %s53_s5 = sshll.u32 %s51_s4, 4  ;;  %s54_s5 = int_to_ptr.vmem [resolvable:$true] %s53_s5 }
  0x31   : > { %s263_s6 = sshll.u32 %s44_s3, 4  ;;  %s57_s12 = sadd.s32 2, %s575_s20 }
  0x32   : > { %s46_s11 = scalar_lea.hbm %s761_s1, %s263_s6 }
  0x33   : > { %s332_s15 = scalar_lea.hbm %s46_s11, 32  ;;  %p335_p2 = scmp.lt.u32.totalorder %s46_s11, %s761_s1 }
  0x34   : > { %p333_p1 = scmp.ne.s32.totalorder %s46_s11, %s332_s15  ;;  %p336_p3 = scmp.lt.u32.totalorder %s595_s18, %s332_s15 }
  0x35   : > { %p338_p5 = scmp.lt.u32.totalorder %s332_s15, %s46_s11 }
  0x36   : > { %p337_p4 = por %p336_p3, %p335_p2 }
  0x38   : > { %p339_p6 = por %p338_p5, %p337_p4 }
  0x3a   : > { %p340_p7 = pnand %p339_p6, %p333_p1 }
  0x3c   : > { %343 = shalt.err (!%p340_p7)  }
  0x3d   : > { %s344_s26 = scalar_lea.vmem %s54_s5, 32  ;;  %p349_p9 = scmp.lt.s32.totalorder %s54_s5, %s603_s24 }
  0x3e   : > { %p345_p8 = scmp.ne.s32.totalorder %s54_s5, %s344_s26  ;;  %p350_p10 = scmp.lt.s32.totalorder %s606_s25, %s344_s26 }
  0x40   : > { %p351_p11 = por %p350_p10, %p349_p9 }
  0x42   : > { %p352_p12 = pnand %p351_p11, %p345_p8 }
  0x44   : > { %355 = shalt.err (!%p352_p12)  }
  0x45   : > { %56 = dma.hbm_to_vmem [thread:$0]  %s46_s11, 32, %s54_s5, [#allocation2], %s538_s27, %s538_s27, %s539_s29 }
  0x46   : > { %s59_s28 = sld [smem:[#allocation4 + %s57_s12]]  ;;  %s66_s8 = sshrl.u32 %s57_s12, 3 }
  0x47   : > { %s67_s10 = sand.u32 7, %s57_s12   ;;  %s267_s13 = sshll.u32 %s66_s8, 4 }
  0x48   : > { %s69_s14 = sadd.s32 %s267_s13, %s67_s10  ;;  %s76_s21 = sadd.s32 3, %s575_s20 }
  0x49   : > { %s632_s0 = sld [smem:[#allocation4 + %s76_s21]]  ;;  %s70_s22 = scalar_lea.vmem [#allocation5], %s69_s14 }
  0x4a   : > { %s72_s23 = sshll.u32 %s70_s22, 4  ;;  %s85_s30 = sshrl.u32 %s76_s21, 3  ;;  %s634_s23 = int_to_ptr.vmem [resolvable:$true] %s72_s23 }
  0x4b   : > { %s86_s3 = sand.u32 7, %s76_s21   ;;  %s270_s7 = sshll.u32 %s85_s30, 4 }
  0x4c   : > { %s60_s4 = sshrl.u32 %s59_s28, 3  ;;  %s61_s6 = sand.u32 7, %s59_s28  }
  0x4d   : > { %s265_s5 = sshll.u32 %s60_s4, 4  ;;  %s88_s11 = sadd.s32 %s270_s7, %s86_s3 }
  0x4e   : > { %s63_s9 = sadd.s32 %s265_s5, %s61_s6 }
  0x4f   : > { %s266_s12 = sshll.u32 %s63_s9, 4  ;;  %s79_s15 = sshrl.u32 %s632_s0, 3 }
  0x50   : > { %s65_s26 = scalar_lea.hbm %s761_s1, %s266_s12  ;;  %s80_s8 = sand.u32 7, %s632_s0  }
  0x51   : > { %s356_s10 = scalar_lea.hbm %s65_s26, 32  ;;  %p359_p0 = scmp.lt.u32.totalorder %s65_s26, %s761_s1 }
  0x52   : > { %p357_p13 = scmp.ne.s32.totalorder %s65_s26, %s356_s10  ;;  %p360_p1 = scmp.lt.u32.totalorder %s595_s18, %s356_s10 }
  0x53   : > { %p362_p3 = scmp.lt.u32.totalorder %s356_s10, %s65_s26 }
  0x54   : > { %p361_p2 = por %p360_p1, %p359_p0 }
  0x56   : > { %p363_p4 = por %p362_p3, %p361_p2 }
  0x58   : > { %p364_p5 = pnand %p363_p4, %p357_p13 }
  0x5a   : > { %367 = shalt.err (!%p364_p5)  }
  0x5b   : > { %s368_s28 = scalar_lea.vmem %s634_s23, 32  ;;  %p373_p7 = scmp.lt.s32.totalorder %s634_s23, %s603_s24 }
  0x5c   : > { %p369_p6 = scmp.ne.s32.totalorder %s634_s23, %s368_s28  ;;  %p374_p8 = scmp.lt.s32.totalorder %s606_s25, %s368_s28 }
  0x5e   : > { %p375_p9 = por %p374_p8, %p373_p7 }
  0x60   : > { %p376_p10 = pnand %p375_p9, %p369_p6 }
  0x62   : > { %379 = shalt.err (!%p376_p10)  }
  0x63   : > { %75 = dma.hbm_to_vmem [thread:$0]  %s65_s26, 32, %s634_s23, [#allocation2], %s538_s27, %s538_s27, %s539_s29 }
  0x64   : > { %s268_s21 = sshll.u32 %s79_s15, 4  ;;  %s89_s22 = scalar_lea.vmem [#allocation5], %s88_s11 }
  0x65   : > { %s82_s0 = sadd.s32 %s268_s21, %s80_s8  ;;  %s91_s30 = sshll.u32 %s89_s22, 4  ;;  %s92_s30 = int_to_ptr.vmem [resolvable:$true] %s91_s30 }
  0x66   : > { %s269_s3 = sshll.u32 %s82_s0, 4  ;;  %s95_s7 = sadd.s32 4, %s575_s20 }
  0x67   : > { %s84_s5 = scalar_lea.hbm %s761_s1, %s269_s3 }
  0x68   : > { %s380_s9 = scalar_lea.hbm %s84_s5, 32  ;;  %p383_p12 = scmp.lt.u32.totalorder %s84_s5, %s761_s1 }
  0x69   : > { %p381_p11 = scmp.ne.s32.totalorder %s84_s5, %s380_s9  ;;  %p384_p13 = scmp.lt.u32.totalorder %s595_s18, %s380_s9 }
  0x6a   : > { %p386_p1 = scmp.lt.u32.totalorder %s380_s9, %s84_s5 }
  0x6b   : > { %p385_p0 = por %p384_p13, %p383_p12 }
  0x6d   : > { %p387_p2 = por %p386_p1, %p385_p0 }
  0x6f   : > { %p388_p3 = pnand %p387_p2, %p381_p11 }
  0x71   : > { %391 = shalt.err (!%p388_p3)  }
  0x72   : > { %s392_s23 = scalar_lea.vmem %s92_s30, 32  ;;  %p397_p5 = scmp.lt.s32.totalorder %s92_s30, %s603_s24 }
  0x73   : > { %p393_p4 = scmp.ne.s32.totalorder %s92_s30, %s392_s23  ;;  %p398_p6 = scmp.lt.s32.totalorder %s606_s25, %s392_s23 }
  0x75   : > { %p399_p7 = por %p398_p6, %p397_p5 }
  0x77   : > { %p400_p8 = pnand %p399_p7, %p393_p4 }
  0x79   : > { %403 = shalt.err (!%p400_p8)  }
  0x7a   : > { %94 = dma.hbm_to_vmem [thread:$0]  %s84_s5, 32, %s92_s30, [#allocation2], %s538_s27, %s538_s27, %s539_s29 }
  0x7b   : > { %s97_s11 = sld [smem:[#allocation4 + %s95_s7]]  ;;  %s104_s15 = sshrl.u32 %s95_s7, 3 }
  0x7c   : > { %s105_s17 = sand.u32 7, %s95_s7   ;;  %s273_s26 = sshll.u32 %s104_s15, 4 }
  0x7d   : > { %s107_s8 = sadd.s32 %s273_s26, %s105_s17  ;;  %s114_s10 = sadd.s32 5, %s575_s20 }
  0x7e   : > { %s668_s13 = sld [smem:[#allocation4 + %s114_s10]]  ;;  %s108_s14 = scalar_lea.vmem [#allocation5], %s107_s8 }
  0x7f   : > { %s110_s28 = sshll.u32 %s108_s14, 4  ;;  %s123_s21 = sshrl.u32 %s114_s10, 3  ;;  %s670_s28 = int_to_ptr.vmem [resolvable:$true] %s110_s28 }
  0x80   : > { %s124_s0 = sand.u32 7, %s114_s10   ;;  %s276_s4 = sshll.u32 %s123_s21, 4 }
  0x81   : > { %s98_s22 = sshrl.u32 %s97_s11, 3  ;;  %s99_s3 = sand.u32 7, %s97_s11  }
  0x82   : > { %s271_s30 = sshll.u32 %s98_s22, 4  ;;  %s126_s5 = sadd.s32 %s276_s4, %s124_s0 }
  0x83   : > { %s101_s6 = sadd.s32 %s271_s30, %s99_s3 }
  0x84   : > { %s272_s7 = sshll.u32 %s101_s6, 4  ;;  %s117_s9 = sshrl.u32 %s668_s13, 3 }
  0x85   : > { %s103_s23 = scalar_lea.hbm %s761_s1, %s272_s7  ;;  %s118_s15 = sand.u32 7, %s668_s13  }
  0x86   : > { %s404_s17 = scalar_lea.hbm %s103_s23, 32  ;;  %p407_p10 = scmp.lt.u32.totalorder %s103_s23, %s761_s1 }
  0x87   : > { %p405_p9 = scmp.ne.s32.totalorder %s103_s23, %s404_s17  ;;  %p408_p11 = scmp.lt.u32.totalorder %s595_s18, %s404_s17 }
  0x88   : > { %p410_p13 = scmp.lt.u32.totalorder %s404_s17, %s103_s23 }
  0x89   : > { %p409_p12 = por %p408_p11, %p407_p10 }
  0x8b   : > { %p411_p0 = por %p410_p13, %p409_p12 }
  0x8d   : > { %p412_p1 = pnand %p411_p0, %p405_p9 }
  0x8f   : > { %415 = shalt.err (!%p412_p1)  }
  0x90   : > { %s416_s11 = scalar_lea.vmem %s670_s28, 32  ;;  %p421_p3 = scmp.lt.s32.totalorder %s670_s28, %s603_s24 }
  0x91   : > { %p417_p2 = scmp.ne.s32.totalorder %s670_s28, %s416_s11  ;;  %p422_p4 = scmp.lt.s32.totalorder %s606_s25, %s416_s11 }
  0x93   : > { %p423_p5 = por %p422_p4, %p421_p3 }
  0x95   : > { %p424_p6 = pnand %p423_p5, %p417_p2 }
  0x97   : > { %427 = shalt.err (!%p424_p6)  }
  0x98   : > { %113 = dma.hbm_to_vmem [thread:$0]  %s103_s23, 32, %s670_s28, [#allocation2], %s538_s27, %s538_s27, %s539_s29 }
  0x99   : > { %s274_s10 = sshll.u32 %s117_s9, 4  ;;  %s127_s14 = scalar_lea.vmem [#allocation5], %s126_s5 }
  0x9a   : > { %s120_s13 = sadd.s32 %s274_s10, %s118_s15  ;;  %s129_s21 = sshll.u32 %s127_s14, 4  ;;  %s130_s21 = int_to_ptr.vmem [resolvable:$true] %s129_s21 }
  0x9b   : > { %s275_s0 = sshll.u32 %s120_s13, 4  ;;  %s133_s4 = sadd.s32 6, %s575_s20 }
  0x9c   : > { %s122_s30 = scalar_lea.hbm %s761_s1, %s275_s0 }
  0x9d   : > { %s428_s6 = scalar_lea.hbm %s122_s30, 32  ;;  %p431_p8 = scmp.lt.u32.totalorder %s122_s30, %s761_s1 }
  0x9e   : > { %p429_p7 = scmp.ne.s32.totalorder %s122_s30, %s428_s6  ;;  %p432_p9 = scmp.lt.u32.totalorder %s595_s18, %s428_s6 }
  0x9f   : > { %p434_p11 = scmp.lt.u32.totalorder %s428_s6, %s122_s30 }
  0xa0   : > { %p433_p10 = por %p432_p9, %p431_p8 }
  0xa2   : > { %p435_p12 = por %p434_p11, %p433_p10 }
  0xa4   : > { %p436_p13 = pnand %p435_p12, %p429_p7 }
  0xa6   : > { %439 = shalt.err (!%p436_p13)  }
  0xa7   : > { %s440_s28 = scalar_lea.vmem %s130_s21, 32  ;;  %p445_p1 = scmp.lt.s32.totalorder %s130_s21, %s603_s24 }
  0xa8   : > { %p441_p0 = scmp.ne.s32.totalorder %s130_s21, %s440_s28  ;;  %p446_p2 = scmp.lt.s32.totalorder %s606_s25, %s440_s28 }
  0xaa   : > { %p447_p3 = por %p446_p2, %p445_p1 }
  0xac   : > { %p448_p4 = pnand %p447_p3, %p441_p0 }
  0xae   : > { %451 = shalt.err (!%p448_p4)  }
  0xaf   : > { %132 = dma.hbm_to_vmem [thread:$0]  %s122_s30, 32, %s130_s21, [#allocation2], %s538_s27, %s538_s27, %s539_s29 }
  0xb0   : > { %s135_s5 = sld [smem:[#allocation4 + %s133_s4]]  ;;  %s142_s9 = sshrl.u32 %s133_s4, 3 }
  0xb1   : > { %s143_s16 = sand.u32 7, %s133_s4   ;;  %s279_s23 = sshll.u32 %s142_s9, 4 }
  0xb2   : > { %s145_s15 = sadd.s32 %s279_s23, %s143_s16  ;;  %s152_s17 = sadd.s32 7, %s575_s20 }
  0xb3   : > { %s704_s26 = sld [smem:[#allocation4 + %s152_s17]]  ;;  %s146_s8 = scalar_lea.vmem [#allocation5], %s145_s15 }
  0xb4   : > { %s148_s11 = sshll.u32 %s146_s8, 4  ;;  %s161_s10 = sshrl.u32 %s152_s17, 3  ;;  %s706_s11 = int_to_ptr.vmem [resolvable:$true] %s148_s11 }
  0xb5   : > { %s162_s13 = sand.u32 7, %s152_s17   ;;  %s282_s22 = sshll.u32 %s161_s10, 4 }
  0xb6   : > { %s136_s14 = sshrl.u32 %s135_s5, 3  ;;  %s137_s0 = sand.u32 7, %s135_s5  }
  0xb7   : > { %s277_s21 = sshll.u32 %s136_s14, 4  ;;  %s164_s30 = sadd.s32 %s282_s22, %s162_s13 }
  0xb8   : > { %s139_s3 = sadd.s32 %s277_s21, %s137_s0 }
  0xb9   : > { %s278_s4 = sshll.u32 %s139_s3, 4  ;;  %s155_s6 = sshrl.u32 %s704_s26, 3 }
  0xba   : > { %s141_s12 = scalar_lea.hbm %s761_s1, %s278_s4  ;;  %s156_s28 = sand.u32 7, %s704_s26  }
  0xbb   : > { %s452_s9 = scalar_lea.hbm %s141_s12, 32  ;;  %p455_p6 = scmp.lt.u32.totalorder %s141_s12, %s761_s1 }
  0xbc   : > { %p453_p5 = scmp.ne.s32.totalorder %s141_s12, %s452_s9  ;;  %p456_p7 = scmp.lt.u32.totalorder %s595_s18, %s452_s9 }
  0xbd   : > { %p458_p9 = scmp.lt.u32.totalorder %s452_s9, %s141_s12 }
  0xbe   : > { %p457_p8 = por %p456_p7, %p455_p6 }
  0xc0   : > { %p459_p10 = por %p458_p9, %p457_p8 }
  0xc2   : > { %p460_p11 = pnand %p459_p10, %p453_p5 }
  0xc4   : > { %463 = shalt.err (!%p460_p11)  }
  0xc5   : > { %s464_s5 = scalar_lea.vmem %s706_s11, 32  ;;  %p469_p13 = scmp.lt.s32.totalorder %s706_s11, %s603_s24 }
  0xc6   : > { %p465_p12 = scmp.ne.s32.totalorder %s706_s11, %s464_s5  ;;  %p470_p0 = scmp.lt.s32.totalorder %s606_s25, %s464_s5 }
  0xc8   : > { %p471_p1 = por %p470_p0, %p469_p13 }
  0xca   : > { %p472_p2 = pnand %p471_p1, %p465_p12 }
  0xcc   : > { %475 = shalt.err (!%p472_p2)  }
  0xcd   : > { %151 = dma.hbm_to_vmem [thread:$0]  %s141_s12, 32, %s706_s11, [#allocation2], %s538_s27, %s538_s27, %s539_s29 }
  0xce   : > { %s280_s15 = sshll.u32 %s155_s6, 4  ;;  %s165_s26 = scalar_lea.vmem [#allocation5], %s164_s30 }
  0xcf   : > { %s158_s17 = sadd.s32 %s280_s15, %s156_s28  ;;  %s167_s8 = sshll.u32 %s165_s26, 4  ;;  %s168_s8 = int_to_ptr.vmem [resolvable:$true] %s167_s8 }
  0xd0   : > { %s281_s10 = sshll.u32 %s158_s17, 4 }
  0xd1   : > { %s160_s0 = scalar_lea.hbm %s761_s1, %s281_s10 }
  0xd2   : > { %s476_s21 = scalar_lea.hbm %s160_s0, 32  ;;  %p479_p4 = scmp.lt.u32.totalorder %s160_s0, %s761_s1 }
  0xd3   : > { %p477_p3 = scmp.ne.s32.totalorder %s160_s0, %s476_s21  ;;  %p480_p5 = scmp.lt.u32.totalorder %s595_s18, %s476_s21 }
  0xd4   : > { %p482_p7 = scmp.lt.u32.totalorder %s476_s21, %s160_s0 }
  0xd5   : > { %p481_p6 = por %p480_p5, %p479_p4 }
  0xd7   : > { %p483_p8 = por %p482_p7, %p481_p6 }
  0xd9   : > { %p484_p9 = pnand %p483_p8, %p477_p3 }
  0xdb   : > { %487 = shalt.err (!%p484_p9)  }
  0xdc   : > { %s488_s11 = scalar_lea.vmem %s168_s8, 32  ;;  %p493_p11 = scmp.lt.s32.totalorder %s168_s8, %s603_s24 }
  0xdd   : > { %p489_p10 = scmp.ne.s32.totalorder %s168_s8, %s488_s11  ;;  %p494_p12 = scmp.lt.s32.totalorder %s606_s25, %s488_s11 }
  0xdf   : > { %p495_p13 = por %p494_p12, %p493_p11 }
  0xe1   : > { %p496_p0 = pnand %p495_p13, %p489_p10 }
  0xe3   : > { %499 = shalt.err (!%p496_p0)  }
  0xe4   : > { %170 = dma.hbm_to_vmem [thread:$0]  %s160_s0, 32, %s168_s8, [#allocation2], %s538_s27, %s538_s27, %s539_s29 }
  0xe5   : > { %s18_s19 = sadd.s32 1, %s534_s19  }
  0xe6   : > { %p15_p1 = scmp.ge.s32.totalorder %s18_s19, 2  }
  0xe8   :  { %17 = sbr.rel (!%p15_p1) target bundleno = 13 (0xd), region = 43 }
  0xef   :  { %528 = dma.done.wait [#allocation2], 512 }
  0xf0   :  { %529 = vsyncadd [#allocation2], 4294966784  ;;  %p501_p2 = scmp.ne.s32.totalorder %s603_s24, %s606_s25  ;;  %p505_p3 = scmp.lt.s32.totalorder %s603_s24, %s603_s24 }
  0xf1   :  { %p506_p4 = scmp.lt.s32.totalorder %s606_s25, %s606_s25 }
  0xf3   :  { %p507_p5 = por %p506_p4, %p505_p3 }
  0xf5   :  { %p508_p6 = pnand %p507_p5, %p501_p2 }
  0xf7   :  { %511 = shalt.err (!%p508_p6)
}
  0xf8   :  { %s512_s29 = scalar_lea.hbm %s762_s2, 512 }
  0xf9   :  { %p513_p7 = scmp.ne.s32.totalorder %s762_s2, %s512_s29  ;;  %p516_p8 = scmp.lt.u32.totalorder %s512_s29, %s762_s2 }
  0xfb   :  { %p518_p9 = pnand %p516_p8, %p513_p7 }
  0xfd   :  { %521 = shalt.err (!%p518_p9)
}
  0xfe   :  { %s540_s6 = smov 256   ;;  %s541_s25 = smov 16  }
  0xff   :  { %186 = dma.vmem_to_hbm [thread:$0]  %s603_s24, 512, %s762_s2, [#allocation6], %s540_s6, %s540_s6, %s541_s25  }
 0x100   :  { %530 = dma.done.wait [#allocation6], 512  }
 0x101   :  { %531 = vsyncadd [#allocation6], 4294966784 }
 0x102   :  { %190 = vsyncpa [#allocation6], 1 }
 0x103   :  { %191 = vsyncmov [#allocation2] }
 0x106   :  { %s192_s12 = vpop.sfrf %191 }
 0x107   :  { %p283_p10 = scmp.ne.s32.totalorder %s192_s12, 0 }
 0x109   :  { %196 = shalt.err (%p283_p10)  }

</bundles_post_ra>
